<compile_context>
chip_gen: v6e
topology: v6e:2x2x1
jax: 0.10.0
libtpu: 0.0.40
codegen_flags: <defaults>
</compile_context>

<pallas_src>
import math

import jax
import jax.numpy as jnp
from jax.experimental import pallas as pl
from jax.experimental.pallas import tpu as pltpu

_GELU_C = math.sqrt(2.0 / math.pi)


def _round_up(x, m):
    return (x + m - 1) // m * m


def _hw_config():
    """Per-TPU-generation tile sizes and scoped-VMEM budget."""
    try:
        kind = jax.devices()[0].device_kind.lower()
    except Exception:  # pragma: no cover - non-TPU / query failure
        kind = ""
    if "v7" in kind or "7x" in kind:
        # 64 MiB VMEM per TensorCore, ~310 FLOPs/B ridge, 2 TCs -> even token tiles.
        return dict(tm=384, ti=512, vmem=52 * 1024 * 1024, even_token_tiles=True)
    if "v6" in kind:
        # 128 MiB VMEM, ~650 FLOPs/B ridge -> large token tile.
        return dict(tm=512, ti=512, vmem=100 * 1024 * 1024, even_token_tiles=False)
    if "v5" in kind:
        # ~240 FLOPs/B ridge; bigger I-slabs cut per-step overhead / acc RMW passes.
        return dict(tm=256, ti=1024, vmem=96 * 1024 * 1024, even_token_tiles=False)
    # Unknown hardware: conservative defaults.
    return dict(tm=256, ti=512, vmem=32 * 1024 * 1024, even_token_tiles=False)


def _mlp_kernel(x_ref, w1_ref, b1_ref, w2_ref, b2_ref, o_ref, acc_ref):
    """One (token-tile, I-slab) step of the fused Linear -> NewGELU -> Linear."""
    k = pl.program_id(1)

    @pl.when(k == 0)
    def _init():
        acc_ref[...] = jnp.zeros_like(acc_ref)

    # First matmul (bf16 x bf16 -> f32 on the MXU) + bias for this I-slab.
    h = jnp.dot(x_ref[...], w1_ref[...], preferred_element_type=jnp.float32)
    h = h + b1_ref[...]                                        # (TM, TI) f32

    # NewGELU (tanh approximation), f32 on VPU; tanh runs on the EUP slot.
    h2 = h * h
    g = 0.5 * h * (1.0 + jnp.tanh(_GELU_C * h * (1.0 + 0.044715 * h2)))

    # Second matmul for this I-slab, accumulate into f32 VMEM scratch.
    acc_ref[...] += jnp.dot(g.astype(w2_ref.dtype), w2_ref[...],
                            preferred_element_type=jnp.float32)

    @pl.when(k == pl.num_programs(1) - 1)
    def _finalize():
        o_ref[...] = (acc_ref[...] + b2_ref[...]).astype(o_ref.dtype)


def prepare_mlp_params(w1, b1, w2, b2, *, ti=None):
    """Pad + cast weights once (hoisted out of the per-call path).

    w1: (H, I), b1: (I,), w2: (I, H), b2: (H,) — weights stored as (in, out),
    i.e. PyTorch nn.Linear weight transposed.
    """
    cfg = _hw_config()
    if ti is None:
        ti = cfg["ti"]
    H, I = w1.shape
    Hp = _round_up(H, 128)
    ti = min(ti, _round_up(I, 128))
    Ip = _round_up(I, ti)

    w1p = jnp.pad(w1, ((0, Hp - H), (0, Ip - I))).astype(jnp.bfloat16)
    b1p = jnp.pad(b1, (0, Ip - I)).reshape(1, Ip).astype(jnp.float32)
    w2p = jnp.pad(w2, ((0, Ip - I), (0, Hp - H))).astype(jnp.bfloat16)
    b2p = jnp.pad(b2, (0, Hp - H)).reshape(1, Hp).astype(jnp.float32)
    return dict(w1=w1p, b1=b1p, w2=w2p, b2=b2p, H=H, I=I, Hp=Hp, Ip=Ip, ti=ti)


def mlp_apply(x, params, *, tm=None, out_dtype=jnp.bfloat16):
    """MLP forward (inference): dense_1 -> NewGELU -> dense_2 (dropout = identity).

    x: (B, S, H). `params` from prepare_mlp_params. Output dtype defaults to bf16
    (halves HBM writes and the VMEM output block); accumulation is f32 regardless.
    """
    cfg = _hw_config()
    if tm is None:
        tm = cfg["tm"]

    B, S, H = x.shape
    assert H == params["H"], "hidden size mismatch with prepared params"
    Hp, Ip, ti, I = params["Hp"], params["Ip"], params["ti"], params["I"]
    T = B * S

    # Token tile: multiple of 8 sublanes; even number of tiles on v7x for megacore.
    tm = min(tm, _round_up(T, 8))
    n_tiles = -(-T // tm)
    if cfg["even_token_tiles"] and n_tiles > 1 and (n_tiles % 2):
        n_tiles += 1
    Tp = n_tiles * tm

    # Cast before padding (bf16 pad copy is half the bytes of an f32 one);
    # skip pad entirely for aligned shapes (the common production case).
    x2d = x.reshape(T, H)
    x_bf = x2d if x2d.dtype == jnp.bfloat16 else x2d.astype(jnp.bfloat16)
    needs_pad = (Tp != T) or (Hp != H)
    if needs_pad:
        x_bf = jnp.pad(x_bf, ((0, Tp - T), (0, Hp - H)))

    grid = (Tp // tm, Ip // ti)   # (token tiles [parallel], I slabs [reduction])

    cost = pl.CostEstimate(
        flops=4 * T * H * I,                      # two T x H x I matmuls
        transcendentals=T * I,                    # tanh in NewGELU
        bytes_accessed=int(2 * H * I * 2          # W1 + W2 (bf16)
                           + T * H * 2            # x (bf16)
                           + T * H * jnp.dtype(out_dtype).itemsize  # out
                           + (I + H) * 4),        # biases
    )

    out2d = pl.pallas_call(
        _mlp_kernel,
        out_shape=jax.ShapeDtypeStruct((Tp, Hp), out_dtype),
        grid_spec=pltpu.PrefetchScalarGridSpec(
            num_scalar_prefetch=0,
            grid=grid,
            in_specs=[
                pl.BlockSpec((tm, Hp), lambda i, k: (i, 0)),   # x tile (resident over k)
                pl.BlockSpec((Hp, ti), lambda i, k: (0, k)),   # w1 I-slab
                pl.BlockSpec((1, ti), lambda i, k: (0, k)),    # b1 I-slab
                pl.BlockSpec((ti, Hp), lambda i, k: (k, 0)),   # w2 I-slab
                pl.BlockSpec((1, Hp), lambda i, k: (0, 0)),    # b2 (resident)
            ],
            out_specs=pl.BlockSpec((tm, Hp), lambda i, k: (i, 0)),
            scratch_shapes=[pltpu.VMEM((tm, Hp), jnp.float32)],
        ),
        compiler_params=pltpu.CompilerParams(
            dimension_semantics=("parallel", "arbitrary"),
            vmem_limit_bytes=cfg["vmem"],
        ),
        cost_estimate=cost,
    )(x_bf, params["w1"], params["b1"], params["w2"], params["b2"])

    out = out2d if not needs_pad else out2d[:T, :H]
    return out.reshape(B, S, H)


def mlp_forward(x, w1, b1, w2, b2, **kwargs):
    """Convenience wrapper: prepare params (pad/cast) then apply the kernel."""
    return mlp_apply(x, prepare_mlp_params(w1, b1, w2, b2), **kwargs)


if __name__ == "__main__":
    # config: hidden_size=32, intermediate_size=64, hidden_dropout_prob=0.1 (eval => identity)
    B, S, H, I = 2, 8, 32, 64

    key = jax.random.PRNGKey(0)
    kx, kw1, kb1, kw2, kb2 = jax.random.split(key, 5)

    x = jax.random.normal(kx, (B, S, H), dtype=jnp.float32)
    # Deterministic synthetic parameter init (fan-in style scaling, like nn.Linear default).
    w1 = jax.random.uniform(kw1, (H, I), dtype=jnp.float32,
                            minval=-1.0 / math.sqrt(H), maxval=1.0 / math.sqrt(H))
    b1 = jax.random.uniform(kb1, (I,), dtype=jnp.float32,
                            minval=-1.0 / math.sqrt(H), maxval=1.0 / math.sqrt(H))
    w2 = jax.random.uniform(kw2, (I, H), dtype=jnp.float32,
                            minval=-1.0 / math.sqrt(I), maxval=1.0 / math.sqrt(I))
    b2 = jax.random.uniform(kb2, (H,), dtype=jnp.float32,
                            minval=-1.0 / math.sqrt(I), maxval=1.0 / math.sqrt(I))

    # Prepare (pad + bf16-cast) weights once, then run the kernel.
    params = prepare_mlp_params(w1, b1, w2, b2)
    out = mlp_apply(x, params)
    jax.block_until_ready(out)

    # Pure-JAX f32 reference (original module math). Kernel uses bf16 operands and
    # a bf16 output with f32 accumulation, so tolerance is relaxed accordingly.
    h_ref = x.reshape(-1, H) @ w1 + b1
    g_ref = 0.5 * h_ref * (1.0 + jnp.tanh(math.sqrt(2.0 / math.pi)
                                          * (h_ref + 0.044715 * h_ref ** 3)))
    o_ref = (g_ref @ w2 + b2).reshape(B, S, H)
    assert out.shape == o_ref.shape
    assert jnp.allclose(out.astype(jnp.float32), o_ref, atol=5e-2, rtol=5e-2), \
        "mismatch vs reference"

    print("KERNEL_OK")
</pallas_src>

<mosaic_0001>
module attributes {stable_mosaic.version = 11 : i64} {
  func.func @_mlp_kernel(%arg0: i32, %arg1: i32, %arg2: memref<16x128xbf16, #tpu.memory_space<vmem>>, %arg3: memref<128x128xbf16, #tpu.memory_space<vmem>>, %arg4: memref<1x128xf32, #tpu.memory_space<vmem>>, %arg5: memref<128x128xbf16, #tpu.memory_space<vmem>>, %arg6: memref<1x128xf32, #tpu.memory_space<vmem>>, %arg7: memref<16x128xbf16, #tpu.memory_space<vmem>>, %arg8: memref<16x128xf32, #tpu.memory_space<vmem>>) attributes {dimension_semantics = [#tpu.dimension_semantics<parallel>, #tpu.dimension_semantics<arbitrary>], iteration_bounds = array<i64: 1, 1>, scalar_prefetch = 0 : i64, scratch_operands = 1 : i64, tpu.core_type = #tpu.core_type<tc>, window_params = [{transform_indices = @transform_0, window_bounds = array<i64: 16, 128>}, {transform_indices = @transform_1, window_bounds = array<i64: 128, 128>}, {transform_indices = @transform_2, window_bounds = array<i64: 1, 128>}, {transform_indices = @transform_3, window_bounds = array<i64: 128, 128>}, {pipeline_mode = #tpu.pipeline_mode<synchronous>, transform_indices = @transform_4, window_bounds = array<i64: 1, 128>}, {transform_indices = @transform_5, window_bounds = array<i64: 16, 128>}]} {
    %c0_i32 = arith.constant 0 : i32
    %0 = arith.cmpi eq, %arg1, %c0_i32 : i32
    %1 = arith.extui %0 : i1 to i32
    %c0_i32_0 = arith.constant 0 : i32
    %2 = arith.cmpi ne, %1, %c0_i32_0 : i32
    scf.if %2 {
      %cst_20 = arith.constant 0.000000e+00 : f32
      %32 = vector.broadcast %cst_20 : f32 to vector<16x128xf32>
      %c0_21 = arith.constant 0 : index
      %c0_22 = arith.constant 0 : index
      %33 = vector.load %arg8[%c0_21, %c0_22] : memref<16x128xf32, #tpu.memory_space<vmem>>, vector<16x128xf32>
      tpu.vector_store %arg8[%c0_21, %c0_22], %32 {strides = array<i32>} : memref<16x128xf32, #tpu.memory_space<vmem>>, vector<16x128xf32>,
    } else {
    }
    %c0 = arith.constant 0 : index
    %c0_1 = arith.constant 0 : index
    %3 = vector.load %arg2[%c0, %c0_1] : memref<16x128xbf16, #tpu.memory_space<vmem>>, vector<16x128xbf16>
    %c0_2 = arith.constant 0 : index
    %c0_3 = arith.constant 0 : index
    %4 = vector.load %arg3[%c0_2, %c0_3] : memref<128x128xbf16, #tpu.memory_space<vmem>>, vector<128x128xbf16>
    %cst = arith.constant dense<0.000000e+00> : vector<16x128xf32>
    %5 = tpu.matmul %3, %4, %cst {dimension_numbers = #tpu.dot_dimension_numbers<[1], [0], [0], [1], [0, 0, 1, 1], [], []>} : vector<16x128xbf16>, vector<128x128xbf16>, vector<16x128xf32> -> vector<16x128xf32>
    %c0_4 = arith.constant 0 : index
    %c0_5 = arith.constant 0 : index
    %6 = vector.load %arg4[%c0_4, %c0_5] : memref<1x128xf32, #tpu.memory_space<vmem>>, vector<1x128xf32>
    %7 = vector.broadcast %6 : vector<1x128xf32> to vector<16x128xf32>
    %8 = arith.addf %5, %7 : vector<16x128xf32>
    %9 = arith.mulf %8, %8 : vector<16x128xf32>
    %cst_6 = arith.constant 5.000000e-01 : f32
    %10 = vector.broadcast %cst_6 : f32 to vector<16x128xf32>
    %11 = arith.mulf %10, %8 : vector<16x128xf32>
    %cst_7 = arith.constant 0.797884583 : f32
    %12 = vector.broadcast %cst_7 : f32 to vector<16x128xf32>
    %13 = arith.mulf %12, %8 : vector<16x128xf32>
    %cst_8 = arith.constant 4.471500e-02 : f32
    %14 = vector.broadcast %cst_8 : f32 to vector<16x128xf32>
    %15 = arith.mulf %14, %9 : vector<16x128xf32>
    %cst_9 = arith.constant 1.000000e+00 : f32
    %16 = vector.broadcast %cst_9 : f32 to vector<16x128xf32>
    %17 = arith.addf %16, %15 : vector<16x128xf32>
    %18 = arith.mulf %13, %17 : vector<16x128xf32>
    %19 = math.tanh %18 : vector<16x128xf32>
    %cst_10 = arith.constant 1.000000e+00 : f32
    %20 = vector.broadcast %cst_10 : f32 to vector<16x128xf32>
    %21 = arith.addf %20, %19 : vector<16x128xf32>
    %22 = arith.mulf %11, %21 : vector<16x128xf32>
    %c0_11 = arith.constant 0 : index
    %c0_12 = arith.constant 0 : index
    %23 = vector.load %arg8[%c0_11, %c0_12] : memref<16x128xf32, #tpu.memory_space<vmem>>, vector<16x128xf32>
    %24 = arith.truncf %22 : vector<16x128xf32> to vector<16x128xbf16>
    %c0_13 = arith.constant 0 : index
    %c0_14 = arith.constant 0 : index
    %25 = vector.load %arg5[%c0_13, %c0_14] : memref<128x128xbf16, #tpu.memory_space<vmem>>, vector<128x128xbf16>
    %cst_15 = arith.constant dense<0.000000e+00> : vector<16x128xf32>
    %26 = tpu.matmul %24, %25, %cst_15 {dimension_numbers = #tpu.dot_dimension_numbers<[1], [0], [0], [1], [0, 0, 1, 1], [], []>} : vector<16x128xbf16>, vector<128x128xbf16>, vector<16x128xf32> -> vector<16x128xf32>
    %27 = arith.addf %23, %26 : vector<16x128xf32>
    %c0_16 = arith.constant 0 : index
    %c0_17 = arith.constant 0 : index
    %28 = vector.load %arg8[%c0_16, %c0_17] : memref<16x128xf32, #tpu.memory_space<vmem>>, vector<16x128xf32>
    tpu.vector_store %arg8[%c0_16, %c0_17], %27 {strides = array<i32>} : memref<16x128xf32, #tpu.memory_space<vmem>>, vector<16x128xf32>,
    %c0_i32_18 = arith.constant 0 : i32
    %29 = arith.cmpi eq, %arg1, %c0_i32_18 : i32
    %30 = arith.extui %29 : i1 to i32
    %c0_i32_19 = arith.constant 0 : i32
    %31 = arith.cmpi ne, %30, %c0_i32_19 : i32
    scf.if %31 {
      %c0_20 = arith.constant 0 : index
      %c0_21 = arith.constant 0 : index
      %32 = vector.load %arg8[%c0_20, %c0_21] : memref<16x128xf32, #tpu.memory_space<vmem>>, vector<16x128xf32>
      %c0_22 = arith.constant 0 : index
      %c0_23 = arith.constant 0 : index
      %33 = vector.load %arg6[%c0_22, %c0_23] : memref<1x128xf32, #tpu.memory_space<vmem>>, vector<1x128xf32>
      %34 = vector.broadcast %33 : vector<1x128xf32> to vector<16x128xf32>
      %35 = arith.addf %32, %34 : vector<16x128xf32>
      %36 = arith.truncf %35 : vector<16x128xf32> to vector<16x128xbf16>
      %c0_24 = arith.constant 0 : index
      %c0_25 = arith.constant 0 : index
      %37 = vector.load %arg7[%c0_24, %c0_25] : memref<16x128xbf16, #tpu.memory_space<vmem>>, vector<16x128xbf16>
      tpu.vector_store %arg7[%c0_24, %c0_25], %36 {strides = array<i32>} : memref<16x128xbf16, #tpu.memory_space<vmem>>, vector<16x128xbf16>,
    } else {
    }
    return
  }
  func.func @transform_0(%arg0: i32, %arg1: i32) -> (i32, i32) {
    %c0_i32 = arith.constant 0 : i32
    %c0_i32_0 = arith.constant 0 : i32
    return %arg0, %c0_i32 : i32, i32
  }
  func.func @transform_1(%arg0: i32, %arg1: i32) -> (i32, i32) {
    %c0_i32 = arith.constant 0 : i32
    %c0_i32_0 = arith.constant 0 : i32
    return %c0_i32, %arg1 : i32, i32
  }
  func.func @transform_2(%arg0: i32, %arg1: i32) -> (i32, i32) {
    %c0_i32 = arith.constant 0 : i32
    %c0_i32_0 = arith.constant 0 : i32
    return %c0_i32, %arg1 : i32, i32
  }
  func.func @transform_3(%arg0: i32, %arg1: i32) -> (i32, i32) {
    %c0_i32 = arith.constant 0 : i32
    %c0_i32_0 = arith.constant 0 : i32
    return %arg1, %c0_i32 : i32, i32
  }
  func.func @transform_4(%arg0: i32, %arg1: i32) -> (i32, i32) {
    %c0_i32 = arith.constant 0 : i32
    %c0_i32_0 = arith.constant 0 : i32
    %c0_i32_1 = arith.constant 0 : i32
    return %c0_i32, %c0_i32_0 : i32, i32
  }
  func.func @transform_5(%arg0: i32, %arg1: i32) -> (i32, i32) {
    %c0_i32 = arith.constant 0 : i32
    %c0_i32_0 = arith.constant 0 : i32
    return %arg0, %c0_i32 : i32, i32
  }
}

</mosaic_0001>

<bundles_post_ra>
// kernel: tpu_custom_call.1
= control target key start
LH: loop header
LB: loop body
LE: loop exit
PB: predicated region body
PF: predicated region fallthrough
CT: control target
= control target key end

     0   :  { %10 = vsyncpa [#allocation4], 0  ;;  %s630_s0 = inlined_call_operand.hbm [shape: bf16[16,128], index: 0, kind: input, shape index: {}]   ;;  %s631_s1 = inlined_call_operand.hbm [shape: bf16[128,128], index: 1, kind: input, shape index: {}]   ;;  %s632_s2 = inlined_call_operand.vmem [shape: f32[1,128], index: 2, kind: input, shape index: {}]   ;;  %s633_s3 = inlined_call_operand.hbm [shape: bf16[128,128], index: 3, kind: input, shape index: {}]   ;;  %s634_s4 = inlined_call_operand.vmem [shape: f32[1,128], index: 4, kind: input, shape index: {}]   ;;  %s635_s5 = inlined_call_operand.hbm [shape: bf16[16,128], index: 5, kind: output, shape index: {}]  }
   0x1   :  { %11 = vsyncpa [#allocation7], 0 }
   0x2   :  { %12 = vsyncpa [#allocation5], 0  ;;  %s562_s18 = smov [#allocation6]   ;;  %s563_s20 = smov [#allocation3]  }
   0x3   :  { %s30_s19 = sshll.u32 %s562_s18, 4  ;;  %s18_s21 = sshll.u32 %s563_s20, 4  ;;  %s31_s19 = int_to_ptr.vmem [resolvable:$true] %s30_s19  ;;  %s19_s21 = int_to_ptr.vmem [resolvable:$true] %s18_s21 }
   0x4   :  { %s484_s22 = scalar_lea.vmem %s31_s19, 1024  ;;  %p489_p1 = scmp.lt.s32.totalorder %s31_s19, %s31_s19 }
   0x5   :  { %p485_p0 = scmp.ne.s32.totalorder %s31_s19, %s484_s22  ;;  %p490_p2 = scmp.lt.s32.totalorder %s484_s22, %s484_s22 }
   0x7   :  { %p491_p3 = por %p490_p2, %p489_p1 }
   0x9   :  { %p492_p4 = pnand %p491_p3, %p485_p0 }
   0xb   :  { %495 = shalt.err (!%p492_p4)
}
   0xc   :  { %s564_s23 = smov 64   ;;  %s565_s24 = smov 4  }
   0xd   :  { %36 = dma.hbm_to_vmem [thread:$0]  %s631_s1, 1024, %s31_s19, [#allocation7], %s564_s23, %s564_s23, %s565_s24  }
   0xe   :  { %s504_s27 = scalar_lea.vmem %s19_s21, 128  ;;  %p509_p6 = scmp.lt.s32.totalorder %s19_s21, %s19_s21 }
   0xf   :  { %p505_p5 = scmp.ne.s32.totalorder %s19_s21, %s504_s27  ;;  %p510_p7 = scmp.lt.s32.totalorder %s504_s27, %s504_s27 }
  0x11   :  { %p511_p8 = por %p510_p7, %p509_p6 }
  0x13   :  { %p512_p9 = pnand %p511_p8, %p505_p5 }
  0x15   :  { %515 = shalt.err (!%p512_p9)
}
  0x16   :  { %24 = dma.hbm_to_vmem [thread:$0]  %s630_s0, 128, %s19_s21, [#allocation4], %s564_s23, %s564_s23, %s565_s24  }
  0x17   :  { %s566_s30 = smov [#allocation8]  }
  0x18   :  { %s44_s6 = sshll.u32 %s566_s30, 4  ;;  %s45_s6 = int_to_ptr.vmem [resolvable:$true] %s44_s6 }
  0x19   :  { %s524_s7 = scalar_lea.vmem %s45_s6, 1024  ;;  %p529_p11 = scmp.lt.s32.totalorder %s45_s6, %s45_s6 }
  0x1a   :  { %p525_p10 = scmp.ne.s32.totalorder %s45_s6, %s524_s7  ;;  %p530_p12 = scmp.lt.s32.totalorder %s524_s7, %s524_s7 }
  0x1c   :  { %p531_p13 = por %p530_p12, %p529_p11 }
  0x1e   :  { %p532_p0 = pnand %p531_p13, %p525_p10 }
  0x20   :  { %535 = shalt.err (!%p532_p0)
}
  0x21   :  { %50 = dma.hbm_to_vmem [thread:$0]  %s633_s3, 1024, %s45_s6, [#allocation7], %s564_s23, %s564_s23, %s565_s24  }
  0x22   :  { %556 = dma.done.wait [#allocation4], 128  }
  0x23   :  { %557 = vsyncadd [#allocation4], 4294967168 }
  0x24   :  { %558 = dma.done.wait [#allocation7], 2048  }
  0x25   :  { %559 = vsyncadd [#allocation7], 4294965248  ;;  %v567_v0 = vmov 0.0   ;;  %vm568_vm0 = vmmov 0   ;;  %v455_v1 = vld [vmem:[#allocation6 + $0x38] sm:$0xff]   ;;  %v456_v2 = vld [vmem:[#allocation6 + $0x30] sm:$0xff]  }
  0x26   :  { %407 = vmatprep.subr.bf16.mxu0 %v567_v0  ;;  %423 = vmatprep.mubr.msk.bf16.mxu0 %vm568_vm0, %v567_v0  ;;  %v457_v3 = vld [vmem:[#allocation6 + $0x28] sm:$0xff]   ;;  %v458_v4 = vld [vmem:[#allocation6 + $0x20] sm:$0xff]   ;;  %v459_v5 = vld [vmem:[#allocation6 + $0x18] sm:$0xff]   ;;  %s569_s10 = smov [#allocation9]  }
  0x27   :  { %427 = vmatprep.subr.bf16.mxu1 %v567_v0  ;;  %443 = vmatprep.mubr.msk.bf16.mxu1 %vm568_vm0, %v567_v0  ;;  %v460_v6 = vld [vmem:[#allocation6 + $0x10] sm:$0xff]   ;;  %v461_v7 = vld [vmem:[#allocation6 + $0x8] sm:$0xff]   ;;  %v462_v8 = vld [vmem:[#allocation6] sm:$0xff]   ;;  %s348_s11 = sshll.u32 %s569_s10, 4  ;;  %s349_s11 = int_to_ptr.vmem [resolvable:$true] %s348_s11 }
  0x28   :  { %408 = vmatpush3.bf16.msra.mxu0 %v455_v1  ;;  %v463_v9 = vld [vmem:[#allocation3] sm:$0xff]   ;;  %v465_v11 = vld [vmem:[#allocation8 + $0x30] sm:$0xff]   ;;  %v466_v12 = vld [vmem:[#allocation8 + $0x28] sm:$0xff]   ;;  %s536_s12 = scalar_lea.vmem %s349_s11, 128  ;;  %p541_p2 = scmp.lt.s32.totalorder %s349_s11, %s349_s11 }
  0x29   :  { %409 = vmatprep.subr.bf16.mxu0 %v567_v0  ;;  %v464_v10 = vld [vmem:[#allocation8 + $0x38] sm:$0xff]   ;;  %v467_v13 = vld [vmem:[#allocation8 + $0x20] sm:$0xff]   ;;  %v469_v15 = vld [vmem:[#allocation8 + $0x10] sm:$0xff]   ;;  %p537_p1 = scmp.ne.s32.totalorder %s349_s11, %s536_s12  ;;  %p542_p3 = scmp.lt.s32.totalorder %s536_s12, %s536_s12 }
  0x2a   :  { %428 = vmatpush3.bf16.msra.mxu1 %v464_v10  ;;  %v468_v14 = vld [vmem:[#allocation8 + $0x18] sm:$0xff]   ;;  %v470_v16 = vld [vmem:[#allocation8 + $0x8] sm:$0xff]   ;;  %v471_v17 = vld [vmem:[#allocation8] sm:$0xff]  }
  0x2b   :  { %429 = vmatprep.subr.bf16.mxu1 %v567_v0  ;;  %v361_v18 = vld [vmem:[%s632_s2] ss:$0 sm:$0xff]  ;;  %p543_p4 = por %p542_p3, %p541_p2 }
  0x2c   :  { %410 = vmatpush3.bf16.msra.mxu0 %v456_v2  ;;  %v379_v45 = vld [vmem:[%s634_s4] ss:$0 sm:$0xff] }
  0x2d   :  { %411 = vmatprep.subr.bf16.mxu0 %v567_v0  ;;  %p544_p5 = pnand %p543_p4, %p537_p1 }
  0x2e   :  { %430 = vmatpush3.bf16.msra.mxu1 %v465_v11 }
  0x2f   :  { %431 = vmatprep.subr.bf16.mxu1 %v567_v0 }
  0x30   :  { %412 = vmatpush3.bf16.msra.mxu0 %v457_v3 }
  0x31   :  { %413 = vmatprep.subr.bf16.mxu0 %v567_v0 }
  0x32   :  { %432 = vmatpush3.bf16.msra.mxu1 %v466_v12 }
  0x33   :  { %433 = vmatprep.subr.bf16.mxu1 %v567_v0 }
  0x34   :  { %414 = vmatpush3.bf16.msra.mxu0 %v458_v4 }
  0x35   :  { %415 = vmatprep.subr.bf16.mxu0 %v567_v0 }
  0x36   :  { %434 = vmatpush3.bf16.msra.mxu1 %v467_v13 }
  0x37   :  { %435 = vmatprep.subr.bf16.mxu1 %v567_v0 }
  0x38   :  { %416 = vmatpush3.bf16.msra.mxu0 %v459_v5 }
  0x39   :  { %417 = vmatprep.subr.bf16.mxu0 %v567_v0 }
  0x3a   :  { %436 = vmatpush3.bf16.msra.mxu1 %v468_v14 }
  0x3b   :  { %437 = vmatprep.subr.bf16.mxu1 %v567_v0 }
  0x3c   :  { %418 = vmatpush3.bf16.msra.mxu0 %v460_v6 }
  0x3d   :  { %419 = vmatprep.subr.bf16.mxu0 %v567_v0 }
  0x3e   :  { %438 = vmatpush3.bf16.msra.mxu1 %v469_v15 }
  0x3f   :  { %439 = vmatprep.subr.bf16.mxu1 %v567_v0 }
  0x40   :  { %420 = vmatpush3.bf16.msra.mxu0 %v461_v7 }
  0x41   :  { %421 = vmatprep.subr.bf16.mxu0 %v567_v0 }
  0x42   :  { %440 = vmatpush3.bf16.msra.mxu1 %v470_v16 }
  0x43   :  { %441 = vmatprep.subr.bf16.mxu1 %v567_v0 }
  0x44   :  { %422 = vmatpush3.bf16.msra.mxu0 %v462_v8 }
  0x46   :  { %442 = vmatpush3.bf16.msra.mxu1 %v471_v17 }
  0x47   :  { %424 = vmatmul.mubr.bf16.vlgmr.msra.gmra.mxu0 %v463_v9 }
 0x107   :  { %v182_v19 = vpop.f32.mrf.mxu0 }
 0x108   :  { %v183_v20 = vadd.f32 %v361_v18, %v182_v19 }
 0x109   :  { %v425_v21 = vpop.f32.mrf.mxu0 }
 0x10a   :  { %v189_v22 = vmul.f32 %v183_v20, %v183_v20  ;;  %v193_v27 = vmul.f32 0.7978846, %v183_v20  ;;  %v191_v38 = vmul.f32 0.5, %v183_v20 }
 0x10b   :  { %v185_v23 = vpop.f32.mrf.mxu0 }
 0x10c   :  { %v195_v24 = vmul.f32 0.044715, %v189_v22  ;;  %v186_v25 = vadd.f32 %v361_v18, %v185_v23 }
 0x10d   :  { %v426_v26 = vpop.f32.mrf.mxu0 }
 0x10e   :  { %v197_v28 = vadd.f32 1.0, %v195_v24  ;;  %v190_v29 = vmul.f32 %v186_v25, %v186_v25  ;;  %v194_v32 = vmul.f32 0.7978846, %v186_v25  ;;  %v192_v39 = vmul.f32 0.5, %v186_v25 }
 0x110   :  { %v199_v30 = vmul.f32 %v197_v28, %v193_v27  ;;  %v196_v31 = vmul.f32 0.044715, %v190_v29 }
 0x112   :  { %472 = vtanh.f32 %v199_v30  ;;  %v198_v33 = vadd.f32 1.0, %v196_v31 }
 0x114   :  { %v200_v34 = vmul.f32 %v198_v33, %v194_v32 }
 0x116   :  { %474 = vtanh.f32 %v200_v34 }
 0x11f   :  { %v473_v35 = vpop.eup %472 }
 0x120   :  { %v203_v36 = vadd.f32 1.0, %v473_v35 }
 0x122   :  { %v205_v41 = vmul.f32 %v203_v36, %v191_v38 }
 0x123   :  { %v475_v37 = vpop.eup %474 }
 0x124   :  { %v204_v40 = vadd.f32 1.0, %v475_v37 }
 0x126   :  { %v206_v42 = vmul.f32 %v204_v40, %v192_v39 }
 0x128   :  { %v209_v43 = vpack.c.bf16 %v206_v42, %v205_v41 }
 0x12a   :  { %444 = vmatmul.mubr.bf16.vlgmr.msra.gmra.mxu1 %v209_v43 }
 0x1ea   :  { %v308_v44 = vpop.f32.mrf.mxu1 }
 0x1eb   :  { %v331_v48 = vadd.f32 %v379_v45, %v308_v44 }
 0x1ec   :  { %v445_v46 = vpop.f32.mrf.mxu1 }
 0x1ee   :  { %v311_v47 = vpop.f32.mrf.mxu1 }
 0x1ef   :  { %v332_v49 = vadd.f32 %v379_v45, %v311_v47 }
 0x1f0   :  { %v446_v50 = vpop.f32.mrf.mxu1 }
 0x1f1   :  { %v387_v51 = vpack.c.bf16 %v332_v49, %v331_v48 }
 0x1f3   :  { %388 = vst [vmem:[#allocation9] sm:$0xff] %v387_v51  }
 0x1f4   :  { %547 = shalt.err (!%p544_p5)
}
 0x1f5   :  { %354 = dma.vmem_to_hbm [thread:$0]  %s349_s11, 128, %s635_s5, [#allocation5], %s564_s23, %s564_s23, %s565_s24  }
 0x1f6   :  { %560 = dma.done.wait [#allocation5], 128  }
 0x1f7   :  { %561 = vsyncadd [#allocation5], 4294967168 }
 0x1f8   :  { %358 = vsyncpa [#allocation4], 1 }
 0x1f9   :  { %359 = vsyncpa [#allocation7], 1 }
 0x1fa   :  { %360 = vsyncpa [#allocation5], 1 }

</bundles_post_ra>
